<compile_context>
chip_gen: v7x
topology: tpu7x:2x2x1
jax: 0.10.0
libtpu: 0.0.40
codegen_flags: <defaults>
</compile_context>

<pallas_src>
import jax
import jax.numpy as jnp
from jax.experimental import pallas as pl
from jax.experimental.pallas import tpu as pltpu


def _affinity_kernel(mol_ref, prot_ref, wm_ref, wp_ref, b_ref, out_ref):
    # VPU multiply + lane reduction (no MXU).  Accumulate in f32.
    mol = mol_ref[...].astype(jnp.float32)          # (tb, Dm)
    prot = prot_ref[...].astype(jnp.float32)        # (tb, Dp)
    acc = jnp.sum(mol * wm_ref[...], axis=-1, keepdims=True)      # (tb, 1)
    acc = acc + jnp.sum(prot * wp_ref[...], axis=-1, keepdims=True)
    out_ref[...] = (acc + b_ref[0]).astype(out_ref.dtype)


def _round_up(x, m):
    return ((x + m - 1) // m) * m


def _vmem_bytes_estimate(tb, dm, dp):
    """Double-buffered VMEM footprint with 128-lane padding (f32)."""
    lane = 128
    pad = lambda d: _round_up(d, lane)
    per_step = tb * (pad(dm) + pad(dp) + lane) * 4   # mol + prot + out tiles
    return 2 * per_step                               # double-buffered


def affinity_concat_linear(mol_emb, prot_emb, weight, bias, *, block_batch=8192):
    """Fused forward pass. Returns shape [B] (matching torch .squeeze())."""
    B, Dm = mol_emb.shape
    B2, Dp = prot_emb.shape
    assert B == B2 and weight.shape == (Dm + Dp, 1)

    # Split (Dm+Dp, 1) weight into (1, Dm)/(1, Dp) rows once, outside the grid.
    w_mol = weight[:Dm].reshape(1, Dm).astype(jnp.float32)
    w_prot = weight[Dm:].reshape(1, Dp).astype(jnp.float32)
    bias = bias.reshape(1).astype(jnp.float32)

    # Batch tile: multiple of 8 always (sublane rule applies to the block
    # shape, not the array).  The ragged last tile is masked by Pallas, so no
    # activation padding/copy in HBM is needed.
    tb = _round_up(min(block_batch, B), 8)
    n_tiles = pl.cdiv(B, tb)

    # Budget scoped VMEM against the lane-padded tile sizes (+ headroom).
    vmem_limit = max(_vmem_bytes_estimate(tb, Dm, Dp) + (8 << 20), 32 << 20)

    out = pl.pallas_call(
        _affinity_kernel,
        out_shape=jax.ShapeDtypeStruct((B, 1), jnp.float32),
        grid=(n_tiles,),
        in_specs=[
            pl.BlockSpec((tb, Dm), lambda i: (i, 0)),            # streamed
            pl.BlockSpec((tb, Dp), lambda i: (i, 0)),            # streamed
            pl.BlockSpec((1, Dm), lambda i: (0, 0)),             # resident row
            pl.BlockSpec((1, Dp), lambda i: (0, 0)),             # resident row
            pl.BlockSpec(memory_space=pltpu.MemorySpace.SMEM),   # scalar bias
        ],
        out_specs=pl.BlockSpec((tb, 1), lambda i: (i, 0)),
        compiler_params=pltpu.CompilerParams(
            dimension_semantics=("parallel",),
            vmem_limit_bytes=vmem_limit),
    )(mol_emb, prot_emb, w_mol, w_prot, bias)

    # torch .squeeze() on [B, 1] -> [B].
    return out[:, 0]


def init_params(key, mol_emb_size, prot_emb_size):
    """PyTorch-Linear-like uniform init; weight stored as [in, out]."""
    kw, kb = jax.random.split(key, 2)
    fan_in = mol_emb_size + prot_emb_size
    bound = 1.0 / jnp.sqrt(fan_in)
    weight = jax.random.uniform(kw, (fan_in, 1), jnp.float32, -bound, bound)
    bias = jax.random.uniform(kb, (1,), jnp.float32, -bound, bound)
    return weight, bias


def reference(mol_emb, prot_emb, weight, bias):
    cat = jnp.concatenate([mol_emb, prot_emb], axis=1)
    return (cat @ weight + bias).reshape(-1)


if __name__ == "__main__":
    B = 100            # not a multiple of the tile -> exercises the ragged tail
    MOL_EMB = 32
    PROT_EMB = 64

    key = jax.random.PRNGKey(0)
    k_mol, k_prot, k_params = jax.random.split(key, 3)

    mol_emb = jax.random.normal(k_mol, (B, MOL_EMB), jnp.float32)
    prot_emb = jax.random.normal(k_prot, (B, PROT_EMB), jnp.float32)
    weight, bias = init_params(k_params, MOL_EMB, PROT_EMB)

    # Small tile so the demo runs a multi-step grid plus a masked partial tile.
    out = affinity_concat_linear(mol_emb, prot_emb, weight, bias, block_batch=64)
    out = jax.block_until_ready(out)

    ref = reference(mol_emb, prot_emb, weight, bias)
    assert out.shape == (B,), out.shape
    assert jnp.allclose(out, ref, atol=1e-5, rtol=1e-5), (out, ref)

    print("KERNEL_OK")
</pallas_src>

<mosaic_0001>
module attributes {stable_mosaic.version = 11 : i64} {
  func.func @_affinity_kernel(%arg0: i32, %arg1: memref<64x32xf32, #tpu.memory_space<vmem>>, %arg2: memref<64x64xf32, #tpu.memory_space<vmem>>, %arg3: memref<1x32xf32, #tpu.memory_space<vmem>>, %arg4: memref<1x64xf32, #tpu.memory_space<vmem>>, %arg5: memref<1xf32, #tpu.memory_space<smem>>, %arg6: memref<64x1xf32, #tpu.memory_space<vmem>>) attributes {dimension_semantics = [#tpu.dimension_semantics<parallel>], iteration_bounds = array<i64: 2>, scalar_prefetch = 0 : i64, scratch_operands = 0 : i64, tpu.core_type = #tpu.core_type<tc>, window_params = [{transform_indices = @transform_0, window_bounds = array<i64: 64, 32>}, {transform_indices = @transform_1, window_bounds = array<i64: 64, 64>}, {pipeline_mode = #tpu.pipeline_mode<synchronous>, transform_indices = @transform_2, window_bounds = array<i64: 1, 32>}, {pipeline_mode = #tpu.pipeline_mode<synchronous>, transform_indices = @transform_3, window_bounds = array<i64: 1, 64>}, {transform_indices = @transform_4, window_bounds = array<i64: 1>}, {transform_indices = @transform_5, window_bounds = array<i64: 64, 1>}]} {
    %c0 = arith.constant 0 : index
    %c0_0 = arith.constant 0 : index
    %0 = vector.load %arg1[%c0, %c0_0] : memref<64x32xf32, #tpu.memory_space<vmem>>, vector<64x32xf32>
    %c0_1 = arith.constant 0 : index
    %c0_2 = arith.constant 0 : index
    %1 = vector.load %arg2[%c0_1, %c0_2] : memref<64x64xf32, #tpu.memory_space<vmem>>, vector<64x64xf32>
    %c0_3 = arith.constant 0 : index
    %c0_4 = arith.constant 0 : index
    %2 = vector.load %arg3[%c0_3, %c0_4] : memref<1x32xf32, #tpu.memory_space<vmem>>, vector<1x32xf32>
    %3 = vector.broadcast %2 : vector<1x32xf32> to vector<64x32xf32>
    %4 = arith.mulf %0, %3 : vector<64x32xf32>
    %cst = arith.constant dense<0.000000e+00> : vector<64xf32>
    %5 = vector.multi_reduction <add>, %4, %cst [1] : vector<64x32xf32> to vector<64xf32>
    %6 = vector.shape_cast %5 : vector<64xf32> to vector<64x1xf32>
    %c0_5 = arith.constant 0 : index
    %c0_6 = arith.constant 0 : index
    %7 = vector.load %arg4[%c0_5, %c0_6] : memref<1x64xf32, #tpu.memory_space<vmem>>, vector<1x64xf32>
    %8 = vector.broadcast %7 : vector<1x64xf32> to vector<64x64xf32>
    %9 = arith.mulf %1, %8 : vector<64x64xf32>
    %cst_7 = arith.constant dense<0.000000e+00> : vector<64xf32>
    %10 = vector.multi_reduction <add>, %9, %cst_7 [1] : vector<64x64xf32> to vector<64xf32>
    %11 = vector.shape_cast %10 : vector<64xf32> to vector<64x1xf32>
    %12 = arith.addf %6, %11 : vector<64x1xf32>
    %c0_8 = arith.constant 0 : index
    %13 = memref.load %arg5[%c0_8] : memref<1xf32, #tpu.memory_space<smem>>
    %14 = vector.broadcast %13 : f32 to vector<64x1xf32>
    %15 = arith.addf %12, %14 : vector<64x1xf32>
    %c0_9 = arith.constant 0 : index
    %c0_10 = arith.constant 0 : index
    %16 = vector.load %arg6[%c0_9, %c0_10] : memref<64x1xf32, #tpu.memory_space<vmem>>, vector<64x1xf32>
    tpu.vector_store %arg6[%c0_9, %c0_10], %15 {strides = array<i32>} : memref<64x1xf32, #tpu.memory_space<vmem>>, vector<64x1xf32>,
    return
  }
  func.func @transform_0(%arg0: i32) -> (i32, i32) {
    %c0_i32 = arith.constant 0 : i32
    %c0_i32_0 = arith.constant 0 : i32
    return %arg0, %c0_i32 : i32, i32
  }
  func.func @transform_1(%arg0: i32) -> (i32, i32) {
    %c0_i32 = arith.constant 0 : i32
    %c0_i32_0 = arith.constant 0 : i32
    return %arg0, %c0_i32 : i32, i32
  }
  func.func @transform_2(%arg0: i32) -> (i32, i32) {
    %c0_i32 = arith.constant 0 : i32
    %c0_i32_0 = arith.constant 0 : i32
    %c0_i32_1 = arith.constant 0 : i32
    return %c0_i32, %c0_i32_0 : i32, i32
  }
  func.func @transform_3(%arg0: i32) -> (i32, i32) {
    %c0_i32 = arith.constant 0 : i32
    %c0_i32_0 = arith.constant 0 : i32
    %c0_i32_1 = arith.constant 0 : i32
    return %c0_i32, %c0_i32_0 : i32, i32
  }
  func.func @transform_4(%arg0: i32) -> i32 {
    %c0_i32 = arith.constant 0 : i32
    %c0_i32_0 = arith.constant 0 : i32
    return %c0_i32 : i32
  }
  func.func @transform_5(%arg0: i32) -> (i32, i32) {
    %c0_i32 = arith.constant 0 : i32
    %c0_i32_0 = arith.constant 0 : i32
    return %arg0, %c0_i32 : i32, i32
  }
}

</mosaic_0001>

<bundles_post_ra>
// kernel: tpu_custom_call.1
= control target key start
LH: loop header
LB: loop body
LE: loop exit
PB: predicated region body
PF: predicated region fallthrough
CT: control target
= control target key end

     0   :  { %s1059_s0 = inlined_call_operand.vmem [shape: f32[100,32], index: 0, kind: input, shape index: {}]   ;;  %s1060_s1 = inlined_call_operand.vmem [shape: f32[100,64], index: 1, kind: input, shape index: {}]   ;;  %s1061_s2 = inlined_call_operand.vmem [shape: f32[1,32], index: 2, kind: input, shape index: {}]   ;;  %s1062_s3 = inlined_call_operand.vmem [shape: f32[1,64], index: 3, kind: input, shape index: {}]   ;;  %s1063_s4 = inlined_call_operand.<no memory space> [shape: f32[1], index: 4, kind: input, shape index: {}]   ;;  %s1064_s5 = inlined_call_operand.vmem [shape: f32[100,1], index: 5, kind: output, shape index: {}]  }
   0x1   :  { %10 = sst [smem:[#allocation2]] %s1063_s4 }
   0x2   :  { %s907_s20 = smov 0   ;;  %s909_s21 = smov 0  }
   0x3   :  { %s911_s22 = smov 0  }
   0x4 LB: > { %s920_s4 = sadd.s32 4294967295, %s840_s22   ;;  %s922_s23 = sadd.s32 1, %s840_s22   ;;  %s840_s22 = sphi %s911_s22, %s1071_s22   ;;  %s836_s21 = sphi %s909_s21, %s1070_s21   ;;  %s832_s20 = sphi %s907_s20, %s1069_s20  }
   0x5   : > { %s135_s24 = ssub.s32 %s840_s22, %s922_s23  ;;  %s138_s25 = sadd.s32 1, %s836_s21 }
   0x6   : > { %p136_p0 = scmp.eq.s32.totalorder %s135_s24, 0  ;;  %p148_p1 = scmp.ne.s32.totalorder %s836_s21, %s832_s20 }
   0x7   : > { %p149_p2 = scmp.eq.s32.totalorder %s920_s4, 1  ;;  %p670_p3 = scmp.ge.s32.totalorder %s840_s22, 1 }
   0x8   : > { %s930_s26 = scalar_select %p136_p0, %s836_s21, %s138_s25  }
   0x9   : > { %p932_p4 = por %p149_p2, %p148_p1  ;;  %p216_p5 = scmp.lt.s32.totalorder %s840_s22, 3 }
   0xb   : > { %p217_p6 = pnand %p670_p3, %p216_p5 }
   0xc   : > { %s937_s28 = sshll.u32 (!%p217_p6), %s920_s4, 3  ;;  %v676_v0 = vld [vmem:[%s1061_s2] ss:$0 sm:$0xff] (!%p217_p6)  ;;  %vm320_vm0 = vcmask (!%p217_p6), 261120   ;;  %vm360_vm1 = vcmask (!%p217_p6), 523264   ;;  %s393_s16 = sld [smem:[#allocation2]] (!%p217_p6) }
   0xd   : > { %220 = sbr.rel (%p217_p6) target bundleno = 252 (0xfc), region = 40  ;;  %p261_p7 = scmp.lt.s32.totalorder (!%p217_p6), %s937_s28, 12  ;;  %v677_v24 = vld [vmem:[%s1062_s3] ss:$0 sm:$0xff] (!%p217_p6)  ;;  %vm403_vm2 = vcmask (!%p217_p6), 7168  }
   0xe   : > { %s253_s17 = sand.u32 (!%p217_p6), 1, %s832_s20  }
   0xf   : > { %s671_s18 = sshll.u32 (!%p217_p6), %s253_s17, 6 }
  0x10   : > { %s980_s19 = scalar_lea.vmem (!%p217_p6), [#allocation3], %s671_s18  }
  0x12   : > { %v394_v58 = vstv (!%p217_p6), %s393_s16 }
  0x14   : > { %s262_s29 = scalar_select %p261_p7, %s937_s28, 12 }
  0x15   : > { %s420_s20 = ssub.s32 (%p932_p4), 13, %s937_s28  ;;  %s695_s22 = sshll.u32 (%p932_p4), %s920_s4, 6 }
  0x16   : > { %s673_s30 = sshll.u32 %s262_s29, 3  ;;  %p421_p8 = scmp.lt.s32.totalorder (%p932_p4), %s420_s20, 8 }
  0x17   : > { %s264_s10 = scalar_lea.vmem %s1059_s0, %s673_s30  ;;  %s954_s13 = scalar_lea.vmem %s1060_s1, %s673_s30 }
  0x18   : > { %v291_v1 = vld [vmem:[%s264_s10 + $0x10] sm:$0xff]  ;;  %v289_v2 = vld [vmem:[%s264_s10] sm:$0xff]  ;;  %v292_v3 = vld [vmem:[%s264_s10 + $0x18] sm:$0xff]  ;;  %s1005_s29 = scalar_lea.vmem (%p932_p4), %s1064_s5, %s695_s22  }
  0x19   : > { %v314_v4 = vmul.f32 %v676_v0, %v291_v1  ;;  %v312_v5 = vmul.f32 %v676_v0, %v289_v2  ;;  %v315_v6 = vmul.f32 %v676_v0, %v292_v3  ;;  %v290_v7 = vld [vmem:[%s264_s10 + $0x8] sm:$0xff]  ;;  %v293_v10 = vld [vmem:[%s264_s10 + $0x20] sm:$0xff]  ;;  %v296_v17 = vld [vmem:[%s264_s10 + $0x38] sm:$0xff] }
  0x1a   : > { %v313_v8 = vmul.f32 %v676_v0, %v290_v7  ;;  %v294_v9 = vld [vmem:[%s264_s10 + $0x28] sm:$0xff]  ;;  %v316_v16 = vmul.f32 %v676_v0, %v293_v10  ;;  %v295_v18 = vld [vmem:[%s264_s10 + $0x30] sm:$0xff]  ;;  %v319_v21 = vmul.f32 %v676_v0, %v296_v17  ;;  %v297_v25 = vld [vmem:[%s954_s13] sm:$0xff] }
  0x1b   : > { %v327_v11 = vsel %vm320_vm0, %v314_v4, 0.0  ;;  %v321_v12 = vsel %vm320_vm0, %v312_v5, 0.0  ;;  %v330_v13 = vsel %vm320_vm0, %v315_v6, 0.0  ;;  %v317_v15 = vmul.f32 %v676_v0, %v294_v9  ;;  %v298_v23 = vld [vmem:[%s954_s13 + $0x8] sm:$0xff]  ;;  %v300_v30 = vld [vmem:[%s954_s13 + $0x18] sm:$0xff]  ;;  %v299_v31 = vld [vmem:[%s954_s13 + $0x10] sm:$0xff] }
  0x1c   : > { %328 = vadd.xlane.f32.xlu1 %v327_v11  ;;  %322 = vadd.xlane.f32.xlu0 %v321_v12  ;;  %v324_v14 = vsel %vm320_vm0, %v313_v8, 0.0  ;;  %v333_v20 = vsel %vm320_vm0, %v316_v16, 0.0  ;;  %v318_v22 = vmul.f32 %v676_v0, %v295_v18  ;;  %v342_v26 = vsel %vm320_vm0, %v319_v21, 0.0  ;;  %v302_v36 = vld [vmem:[%s954_s13 + $0x28] sm:$0xff]  ;;  %v301_v37 = vld [vmem:[%s954_s13 + $0x20] sm:$0xff]  ;;  %v304_v42 = vld [vmem:[%s954_s13 + $0x38] sm:$0xff] }
  0x1d   : > { %v336_v19 = vsel %vm320_vm0, %v317_v15, 0.0  ;;  %v353_v28 = vmul.f32 %v677_v24, %v298_v23  ;;  %v352_v29 = vmul.f32 %v677_v24, %v297_v25  ;;  %v355_v34 = vmul.f32 %v677_v24, %v300_v30  ;;  %v303_v43 = vld [vmem:[%s954_s13 + $0x30] sm:$0xff] }
  0x1e   : > { %v339_v27 = vsel %vm320_vm0, %v318_v22, 0.0  ;;  %v354_v35 = vmul.f32 %v677_v24, %v299_v31  ;;  %v357_v40 = vmul.f32 %v677_v24, %v302_v36  ;;  %v356_v41 = vmul.f32 %v677_v24, %v301_v37 }
  0x1f   : > { %v364_v32 = vsel %vm360_vm1, %v353_v28, 0.0  ;;  %v361_v33 = vsel %vm360_vm1, %v352_v29, 0.0  ;;  %v370_v38 = vsel %vm360_vm1, %v355_v34, 0.0  ;;  %v359_v46 = vmul.f32 %v677_v24, %v304_v42 }
  0x20   : > { %331 = vadd.xlane.f32.xlu1 %v330_v13  ;;  %325 = vadd.xlane.f32.xlu0 %v324_v14  ;;  %v367_v39 = vsel %vm360_vm1, %v354_v35, 0.0  ;;  %v376_v44 = vsel %vm360_vm1, %v357_v40, 0.0  ;;  %v373_v45 = vsel %vm360_vm1, %v356_v41, 0.0  ;;  %v358_v47 = vmul.f32 %v677_v24, %v303_v43 }
  0x21   : > { %v382_v48 = vsel %vm360_vm1, %v359_v46, 0.0 }
  0x22   : > { %v379_v49 = vsel %vm360_vm1, %v358_v47, 0.0 }
  0x24   : > { %337 = vadd.xlane.f32.xlu1 %v336_v19  ;;  %334 = vadd.xlane.f32.xlu0 %v333_v20 }
  0x28   : > { %343 = vadd.xlane.f32.xlu1 %v342_v26  ;;  %340 = vadd.xlane.f32.xlu0 %v339_v27 }
  0x2c   : > { %365 = vadd.xlane.f32.xlu1 %v364_v32  ;;  %362 = vadd.xlane.f32.xlu0 %v361_v33 }
  0x30   : > { %371 = vadd.xlane.f32.xlu1 %v370_v38  ;;  %368 = vadd.xlane.f32.xlu0 %v367_v39 }
  0x34   : > { %377 = vadd.xlane.f32.xlu1 %v376_v44  ;;  %374 = vadd.xlane.f32.xlu0 %v373_v45 }
  0x38   : > { %383 = vadd.xlane.f32.xlu1 %v382_v48  ;;  %380 = vadd.xlane.f32.xlu0 %v379_v49 }
  0xa9   : > { %v329_v50 = vpop.xlane.xlu1 %328  ;;  %v323_v51 = vpop.xlane.xlu0 %322 }
  0xad   : > { %v332_v52 = vpop.xlane.xlu1 %331  ;;  %v326_v53 = vpop.xlane.xlu0 %325 }
  0xb1   : > { %v338_v54 = vpop.xlane.xlu1 %337  ;;  %v335_v55 = vpop.xlane.xlu0 %334 }
  0xb5   : > { %v344_v56 = vpop.xlane.xlu1 %343  ;;  %v341_v57 = vpop.xlane.xlu0 %340 }
  0xb9   : > { %v366_v59 = vpop.xlane.xlu1 %365  ;;  %v363_v60 = vpop.xlane.xlu0 %362 }
  0xba   : > { %v386_v61 = vadd.f32 %v366_v59, %v326_v53  ;;  %v385_v62 = vadd.f32 %v363_v60, %v323_v51 }
  0xbc   : > { %v396_v63 = vadd.f32 %v394_v58, %v386_v61  ;;  %v395_v0 = vadd.f32 %v394_v58, %v385_v62 }
  0xbd   : > { %v372_v1 = vpop.xlane.xlu1 %371  ;;  %v369_v2 = vpop.xlane.xlu0 %368 }
  0xbe   : > { %405 = vst.msk [vmem:[%s980_s19 + $0x8] sm:$0xff] %vm403_vm2, %v396_v63  ;;  %404 = vst.msk [vmem:[%s980_s19] sm:$0xff] %vm403_vm2, %v395_v0  ;;  %v388_v3 = vadd.f32 %v372_v1, %v332_v52  ;;  %v387_v4 = vadd.f32 %v369_v2, %v329_v50 }
  0xc0   : > { %v398_v5 = vadd.f32 %v394_v58, %v388_v3  ;;  %v397_v6 = vadd.f32 %v394_v58, %v387_v4 }
  0xc1   : > { %v378_v7 = vpop.xlane.xlu1 %377  ;;  %v375_v8 = vpop.xlane.xlu0 %374 }
  0xc2   : > { %407 = vst.msk [vmem:[%s980_s19 + $0x18] sm:$0xff] %vm403_vm2, %v398_v5  ;;  %406 = vst.msk [vmem:[%s980_s19 + $0x10] sm:$0xff] %vm403_vm2, %v397_v6  ;;  %v390_v9 = vadd.f32 %v378_v7, %v338_v54  ;;  %v389_v10 = vadd.f32 %v375_v8, %v335_v55 }
  0xc4   : > { %v400_v11 = vadd.f32 %v394_v58, %v390_v9  ;;  %v399_v12 = vadd.f32 %v394_v58, %v389_v10  ;;  %418 = sbr.rel (!%p932_p4) target bundleno = 252 (0xfc), region = 44 }
  0xc5   : > { %v384_v13 = vpop.xlane.xlu1 %383  ;;  %v381_v14 = vpop.xlane.xlu0 %380 }
  0xc6   : > { %409 = vst.msk [vmem:[%s980_s19 + $0x28] sm:$0xff] %vm403_vm2, %v400_v11  ;;  %408 = vst.msk [vmem:[%s980_s19 + $0x20] sm:$0xff] %vm403_vm2, %v399_v12  ;;  %v392_v15 = vadd.f32 %v384_v13, %v344_v56  ;;  %v391_v16 = vadd.f32 %v381_v14, %v341_v57 }
  0xc8   : > { %v402_v17 = vadd.f32 %v394_v58, %v392_v15  ;;  %v401_v18 = vadd.f32 %v394_v58, %v391_v16 }
  0xca   : > { %411 = vst.msk [vmem:[%s980_s19 + $0x38] sm:$0xff] %vm403_vm2, %v402_v17  ;;  %410 = vst.msk [vmem:[%s980_s19 + $0x30] sm:$0xff] %vm403_vm2, %v401_v18 }
  0xcb   : > { %s1073_s20 = smov (!%p421_p8, %s420_s20), 8 }
  0xcc   : > { %s680_s30 = sshll.u32 %s1073_s20, 7 }
  0xcd   : > { %p683_p9 = scmp.eq.s32.totalorder %s680_s30, 0 }
  0xce   : > { %s1011_s6 = sshrl.u32 (!%p683_p9), %s1073_s20, 3 }
  0xcf   : > { %429 = sbr.rel (%p683_p9) target bundleno = 252 (0xfc), region = 48  ;;  %p684_p10 = scmp.le.s32.totalorder (!%p683_p9), %s1011_s6, 0 }
  0xd6   : > { %617 = sbr.rel (%p684_p10) target bundleno = 231 (0xe7), region = 127  ;;  %s1066_s4 = smov (!%p684_p10), %s1005_s29 }
  0xd7   : > { %s1067_s27 = smov (!%p684_p10), %s980_s19  ;;  %s1020_s28 = smov (!%p684_p10), 0  }
  0xd8   : > { %s1022_s7 = smov (!%p684_p10), 0  }
  0xdd LB: >> { %v505_v19 = vld [vmem:[%s848_s27] sm:$0xff]  ;;  %v507_v20 = vld [vmem:[%s848_s27 + $0x8] sm:$0xff]  ;;  %v509_v21 = vld [vmem:[%s848_s27 + $0x10] sm:$0xff]  ;;  %s521_s8 = sadd.s32 1, %s852_s28  ;;  %s499_s7 = sadd.s32 1, %s856_s7   ;;  %s856_s7 = sphi %s1022_s7, %s499_s7   ;;  %s852_s28 = sphi %s1020_s28, %s1068_s28   ;;  %s848_s27 = sphi %s1067_s27, %s526_s27   ;;  %s844_s4 = sphi %s1066_s4, %s527_s4  }
  0xde   : >> { %506 = vst [vmem:[%s844_s4] sm:$0xff] %v505_v19  ;;  %508 = vst [vmem:[%s844_s4 + $0x8] sm:$0xff] %v507_v20  ;;  %v511_v22 = vld [vmem:[%s848_s27 + $0x18] sm:$0xff]  ;;  %v513_v23 = vld [vmem:[%s848_s27 + $0x20] sm:$0xff]  ;;  %p522_p11 = scmp.ge.s32.totalorder %s521_s8, %s1011_s6  ;;  %p498_p12 = scmp.ge.s32.totalorder %s499_s7, %s1011_s6 }
  0xdf   : >> { %510 = vst [vmem:[%s844_s4 + $0x10] sm:$0xff] %v509_v21  ;;  %v515_v24 = vld [vmem:[%s848_s27 + $0x28] sm:$0xff]  ;;  %512 = vst [vmem:[%s844_s4 + $0x18] sm:$0xff] %v511_v22  ;;  %v517_v25 = vld [vmem:[%s848_s27 + $0x30] sm:$0xff] }
  0xe0   : >> { %514 = vst [vmem:[%s844_s4 + $0x20] sm:$0xff] %v513_v23  ;;  %516 = vst [vmem:[%s844_s4 + $0x28] sm:$0xff] %v515_v24  ;;  %v519_v26 = vld [vmem:[%s848_s27 + $0x38] sm:$0xff]  ;;  %s1075_s8 = smov (%p522_p11, %s521_s8), 0  ;;  %501 = sbr.rel (!%p498_p12) target bundleno = 221 (0xdd), region = 133 }
  0xe1   : >> { %518 = vst [vmem:[%s844_s4 + $0x30] sm:$0xff] %v517_v25  ;;  %520 = vst [vmem:[%s844_s4 + $0x38] sm:$0xff] %v519_v26  ;;  %s685_s9 = sshll.u32 %s1075_s8, 6  ;;  %s1068_s28 = smov %s1075_s8 }
  0xe2   : >> { %s526_s27 = scalar_lea.vmem %s980_s19, %s685_s9 [#allocation3]   ;;  %s527_s4 = scalar_lea.vmem %s1005_s29, %s685_s9  }
  0xe7 PF: > { %s1041_s10 = sand.u32 7, %s1073_s20   ;;  %s696_s11 = sshll.u32 %s1011_s6, 6 }
  0xe8   : > { %s532_s12 = scalar_lea.vmem %s980_s19, %s696_s11 [#allocation3]   ;;  %s534_s13 = scalar_lea.vmem %s1005_s29, %s696_s11  }
  0xe9   : > { %p690_p13 = scmp.le.s32.totalorder %s1041_s10, 0 }
  0xea   : > { %s858_s14 = smov (!%p690_p13), %s534_s13   ;;  %s862_s15 = smov (!%p690_p13), %s532_s12  }
  0xeb   : > { %631 = sbr.rel (%p690_p13) target bundleno = 252 (0xfc), region = 138  ;;  %s866_s16 = smov (!%p690_p13), 0  }
  0xec   : > { %s870_s17 = smov (!%p690_p13), 0  }
  0xf2 LB: >> { %v544_v27 = vld [vmem:[%s864_s15] sm:$0xff]  ;;  %s546_s18 = sadd.s32 1, %s868_s16  ;;  %s538_s17 = sadd.s32 1, %s872_s17   ;;  %s872_s17 = sphi %s870_s17, %s538_s17   ;;  %s868_s16 = sphi %s866_s16, %s867_s16   ;;  %s864_s15 = sphi %s862_s15, %s551_s15   ;;  %s860_s14 = sphi %s858_s14, %s552_s14  }
  0xf3   : >> { %545 = vst [vmem:[%s860_s14] sm:$0xff] %v544_v27  ;;  %p547_p0 = scmp.ge.s32.totalorder %s546_s18, %s1041_s10  ;;  %p537_p1 = scmp.ge.s32.totalorder %s538_s17, %s1041_s10 }
  0xf5   : >> { %s1077_s18 = smov (%p547_p0, %s546_s18), 0  ;;  %540 = sbr.rel (!%p537_p1) target bundleno = 242 (0xf2), region = 144 }
  0xf6   : >> { %s691_s19 = sshll.u32 %s1077_s18, 3  ;;  %s867_s16 = smov %s1077_s18  }
  0xf7   : >> { %s551_s15 = scalar_lea.vmem %s532_s12, %s691_s19 [#allocation3]   ;;  %s552_s14 = scalar_lea.vmem %s534_s13, %s691_s19  }
  0xfc PF: > { %p13_p2 = scmp.ge.s32.totalorder %s922_s23, 4   ;;  %s1069_s20 = smov %s836_s21 }
  0xfd   : > { %s1070_s21 = smov %s930_s26  ;;  %s1071_s22 = smov %s922_s23 }
  0xfe   :  { %15 = sbr.rel (!%p13_p2) target bundleno = 4 (0x4), region = 155 }

</bundles_post_ra>
